<compile_context>
chip_gen: v7x
topology: tpu7x:2x2x1
jax: 0.10.0
libtpu: 0.0.40
codegen_flags: <defaults>
</compile_context>

<pallas_src>
import math

import numpy as np
import jax
import jax.numpy as jnp
from jax.experimental import pallas as pl
from jax.experimental.pallas import tpu as pltpu


def _bilinear_upsample_matrix(n_in: int, scale: int) -> np.ndarray:
    """nn.Upsample(scale_factor=scale, mode='bilinear', align_corners=False)
    along one axis, expressed as an (n_out, n_in) matrix (PyTorch semantics)."""
    n_out = n_in * scale
    A = np.zeros((n_out, n_in), dtype=np.float32)
    for j in range(n_out):
        src = (j + 0.5) / scale - 0.5
        if src < 0.0:
            src = 0.0
        i0 = int(math.floor(src))
        i1 = min(i0 + 1, n_in - 1)
        w1 = src - i0
        A[j, i0] += 1.0 - w1
        A[j, i1] += w1
    return A


def _elu_f32(y):
    """ELU(alpha=1) in f32.  Negative branch = expm1(y), computed as exp(y)-1
    with a 3rd-order Taylor branch near zero to avoid cancellation."""
    em1 = jnp.where(
        y > -0.03125,
        y * (1.0 + 0.5 * y * (1.0 + y * (1.0 / 3.0))),
        jnp.exp(jnp.minimum(y, 0.0)) - 1.0,
    )
    return jnp.where(y > 0.0, y, em1)


def _upsample_mod_kernel(x_ref, wf_ref, awg_ref, b_ref, skip_ref, o_ref):
    # x_ref:    (nb, W, C_in*H)       bf16 input, (w, c*H+h) layout
    # wf_ref:   (C_in*H, C_out*Ho)    kron(W_conv, A_H)^T, bf16
    # awg_ref:  (g*Wo, g*W)           kron(I_g, A_W), bf16 (block-diag width upsample)
    # b_ref:    (1, C_out*Ho)         conv bias row, f32 (lane-dense)
    # skip_ref: (nb, Wo, C_out*Ho)    f32
    # o_ref:    (nb, Wo, C_out*Ho)    lane-dense output (lanes = C_out*Ho)
    nb, W, CH = x_ref.shape
    K = wf_ref.shape[1]
    Wo = skip_ref.shape[1]
    g = awg_ref.shape[0] // Wo            # batches per width-matmul chunk

    # (1) Fused height-upsample + 1x1 conv for ALL nb batches in one MXU matmul
    #     (M = nb*W instead of nb small matmuls), f32 accumulation.
    x_all = x_ref[...].reshape(nb * W, CH)                                  # bf16
    z = jnp.dot(x_all, wf_ref[...], preferred_element_type=jnp.float32)    # (nb*W, K)
    zb = z.astype(jnp.bfloat16)

    awg = awg_ref[...]
    bias = jnp.broadcast_to(b_ref[...], (g * Wo, K))    # hoisted: single broadcast

    # (2) Width upsample, g batches at a time, as one block-diagonal matmul
    #     (contraction depth g*W ~ 128); bias + skip add + ELU, store chunk.
    for c in range(nb // g):
        r0 = c * g
        zc = zb[r0 * W:(r0 + g) * W, :]                                     # (g*W, K)
        y = jnp.dot(awg, zc, preferred_element_type=jnp.float32)           # (g*Wo, K)
        sk = skip_ref[pl.ds(r0, g)].reshape(g * Wo, K).astype(jnp.float32)
        y = _elu_f32(y + bias + sk)
        o_ref[pl.ds(r0, g)] = y.reshape(g, Wo, K).astype(o_ref.dtype)


def _pick_nb(n: int, batch_block: int) -> int:
    """Batches per grid step: prefer an even grid of length >= 2 (so v7x's two
    TensorCores both get work), then the largest block <= batch_block."""
    divisors = [d for d in range(1, min(batch_block, n) + 1) if n % d == 0]
    even_grid = [d for d in divisors if (n // d) >= 2 and (n // d) % 2 == 0]
    if even_grid:
        return max(even_grid)
    multi_grid = [d for d in divisors if (n // d) >= 2]
    if multi_grid:
        return max(multi_grid)
    return max(divisors)


def _pick_g(nb: int, w: int, wo: int) -> int:
    """Batches per width-matmul chunk: largest divisor of nb with g*W <= 128."""
    if wo % 8 != 0:            # keep chunk reshapes sublane-aligned
        return 1
    cap = max(1, 128 // max(w, 1))
    return max(d for d in range(1, min(cap, nb) + 1) if nb % d == 0)


def upsample_mod_forward(x, skip, w_conv, b_conv, up=2, batch_block=32):
    """x: (N, C_in, H, W), skip: (N, C_out, H*up, W*up), w_conv: (C_out, C_in)."""
    N, C_in, H, W = x.shape
    C_out = w_conv.shape[0]
    Ho, Wo = H * up, W * up
    CH, K = C_in * H, C_out * Ho

    nb = _pick_nb(N, batch_block)
    g = _pick_g(nb, W, Wo)

    a_h = jnp.asarray(_bilinear_upsample_matrix(H, up))                     # (Ho, H)
    a_w = _bilinear_upsample_matrix(W, up)                                  # (Wo, W)
    # Fused weight: kron(W_conv, A_H)^T — bilinear weights are exact in bf16.
    wf_t = jnp.kron(w_conv.astype(jnp.float32), a_h).T.astype(jnp.bfloat16)  # (CH, K)
    # Block-diagonal width-upsample weight kron(I_g, A_W).
    awg = jnp.asarray(np.kron(np.eye(g, dtype=np.float32), a_w)).astype(jnp.bfloat16)
    b_row = jnp.repeat(b_conv.astype(jnp.float32), Ho).reshape(1, K)

    # Lane-dense relayout; bf16 cast of x fused into the same XLA copy.
    xT = x.transpose(0, 3, 1, 2).reshape(N, W, CH).astype(jnp.bfloat16)
    skipT = skip.transpose(0, 3, 1, 2).reshape(N, Wo, K)

    out_dtype = x.dtype
    out_isz = jnp.dtype(out_dtype).itemsize
    skip_isz = jnp.dtype(skipT.dtype).itemsize

    # VMEM guard (v7x physical VMEM is 64 MiB): weights are fully resident,
    # x/skip/out blocks are double-buffered by the pipeline.
    weight_bytes = wf_t.size * 2 + awg.size * 2 + b_row.size * 4
    block_bytes = nb * W * CH * 2 + nb * Wo * K * skip_isz + nb * Wo * K * out_isz
    vmem_needed = weight_bytes + 2 * block_bytes + (2 << 20)
    if vmem_needed > (56 << 20):
        raise ValueError(
            f"UpsampleMod Pallas kernel needs ~{vmem_needed >> 20} MiB of VMEM "
            f"(> 56 MiB budget). Reduce batch_block, or tile the C_in*H axis of "
            f"the fused kron weight with a reduction grid dimension.")
    vmem_limit = int(min(60 << 20, max(32 << 20, vmem_needed)))

    grid = (N // nb,)

    flops = 2 * N * W * CH * K + 2 * N * g * Wo * W * K
    bytes_accessed = (
        xT.size * 2
        + skipT.size * skip_isz
        + N * Wo * K * out_isz
        + wf_t.size * 2
        + awg.size * 2
        + b_row.size * 4
    )
    cost = pl.CostEstimate(flops=int(flops),
                           transcendentals=int(N * Wo * K),
                           bytes_accessed=int(bytes_accessed))

    outT = pl.pallas_call(
        _upsample_mod_kernel,
        out_shape=jax.ShapeDtypeStruct((N, Wo, K), out_dtype),
        grid=grid,
        in_specs=[
            pl.BlockSpec((nb, W, CH), lambda i: (i, 0, 0)),
            pl.BlockSpec((CH, K), lambda i: (0, 0)),
            pl.BlockSpec((g * Wo, g * W), lambda i: (0, 0)),
            pl.BlockSpec((1, K), lambda i: (0, 0)),
            pl.BlockSpec((nb, Wo, K), lambda i: (i, 0, 0)),
        ],
        out_specs=pl.BlockSpec((nb, Wo, K), lambda i: (i, 0, 0)),
        compiler_params=pltpu.CompilerParams(
            dimension_semantics=("parallel",),
            vmem_limit_bytes=vmem_limit),
        cost_estimate=cost,
    )(xT, wf_t, awg, b_row, skipT)

    # Back to NCHW (module-facing layout).
    return outT.reshape(N, Wo, C_out, Ho).transpose(0, 2, 3, 1)


def upsample_mod_reference(x, skip, w_conv, b_conv, up=2):
    """Plain-JAX f32 reference with the module's semantics."""
    a_h = jnp.asarray(_bilinear_upsample_matrix(x.shape[2], up))
    a_w = jnp.asarray(_bilinear_upsample_matrix(x.shape[3], up))
    xu = jnp.einsum('oh,nchw->ncow', a_h, x)
    xu = jnp.einsum('ncow,qw->ncoq', xu, a_w)
    y = jnp.einsum('kc,ncoq->nkoq', w_conv, xu) + b_conv[None, :, None, None]
    return jax.nn.elu(y + skip)


def upsample_mod_matched_reference(x, skip, w_conv, b_conv, up=2):
    """Plain-JAX reference mirroring the kernel's data flow and its bf16-input /
    f32-accumulate matmul quantization (tight-tolerance check of the Pallas code)."""
    N, C_in, H, W = x.shape
    C_out = w_conv.shape[0]
    Ho, Wo = H * up, W * up
    a_h = jnp.asarray(_bilinear_upsample_matrix(H, up))
    a_w = jnp.asarray(_bilinear_upsample_matrix(W, up))
    wf_t = jnp.kron(w_conv.astype(jnp.float32), a_h).T.astype(jnp.bfloat16)
    aw = a_w.astype(jnp.bfloat16)
    xT = x.transpose(0, 3, 1, 2).reshape(N, W, C_in * H).astype(jnp.bfloat16)
    z = jnp.einsum('nwr,rk->nwk', xT.astype(jnp.float32), wf_t.astype(jnp.float32))
    y = jnp.einsum('qw,nwk->nqk', aw.astype(jnp.float32),
                   z.astype(jnp.bfloat16).astype(jnp.float32))
    b_row = jnp.repeat(b_conv.astype(jnp.float32), Ho).reshape(1, 1, C_out * Ho)
    skipT = skip.transpose(0, 3, 1, 2).reshape(N, Wo, C_out * Ho)
    y = _elu_f32(y + b_row + skipT)
    return y.reshape(N, Wo, C_out, Ho).transpose(0, 2, 3, 1)


if __name__ == "__main__":
    key = jax.random.PRNGKey(0)
    N, C_in, C_out, H, W, up = 2, 4, 4, 16, 16, 2
    k1, k2, k3 = jax.random.split(key, 3)

    x = jax.random.normal(k1, (N, C_in, H, W), jnp.float32)
    skip = jax.random.normal(k2, (N, C_out, H * up, W * up), jnp.float32)

    # Conv(1x1) parameters: MSRA (kaiming_normal_) init, bias = 0 (as in __init__).
    w_conv = jax.random.normal(k3, (C_out, C_in), jnp.float32) * math.sqrt(2.0 / C_in)
    b_conv = jnp.zeros((C_out,), jnp.float32)

    out = jax.block_until_ready(upsample_mod_forward(x, skip, w_conv, b_conv, up=up))
    assert out.shape == (N, C_out, H * up, W * up)

    # 1) Tight check vs. a reference with the SAME bf16-input/f32-accumulate
    #    matmul quantization — validates the Pallas plumbing and layouts.
    ref_matched = upsample_mod_matched_reference(x, skip, w_conv, b_conv, up=up)
    np.testing.assert_allclose(np.asarray(out), np.asarray(ref_matched),
                               rtol=1e-3, atol=1e-3)

    # 2) Loose check vs. the full-f32 module-style reference — validates the
    #    fused-kron math; tolerance is loose because the kernel feeds the MXU
    #    bf16 operands.
    ref_f32 = upsample_mod_reference(x, skip, w_conv, b_conv, up=up)
    np.testing.assert_allclose(np.asarray(out), np.asarray(ref_f32),
                               rtol=1e-1, atol=1e-1)

    print("KERNEL_OK")
</pallas_src>

<mosaic_0001>
module attributes {stable_mosaic.version = 11 : i64} {
  func.func @_upsample_mod_kernel(%arg0: i32, %arg1: memref<1x16x64xbf16, #tpu.memory_space<vmem>>, %arg2: memref<64x128xbf16, #tpu.memory_space<vmem>>, %arg3: memref<32x16xbf16, #tpu.memory_space<vmem>>, %arg4: memref<1x128xf32, #tpu.memory_space<vmem>>, %arg5: memref<1x32x128xf32, #tpu.memory_space<vmem>>, %arg6: memref<1x32x128xf32, #tpu.memory_space<vmem>>) attributes {dimension_semantics = [#tpu.dimension_semantics<parallel>], iteration_bounds = array<i64: 2>, scalar_prefetch = 0 : i64, scratch_operands = 0 : i64, tpu.core_type = #tpu.core_type<tc>, window_params = [{transform_indices = @transform_0, window_bounds = array<i64: 1, 16, 64>}, {pipeline_mode = #tpu.pipeline_mode<synchronous>, transform_indices = @transform_1, window_bounds = array<i64: 64, 128>}, {pipeline_mode = #tpu.pipeline_mode<synchronous>, transform_indices = @transform_2, window_bounds = array<i64: 32, 16>}, {pipeline_mode = #tpu.pipeline_mode<synchronous>, transform_indices = @transform_3, window_bounds = array<i64: 1, 128>}, {transform_indices = @transform_4, window_bounds = array<i64: 1, 32, 128>}, {transform_indices = @transform_5, window_bounds = array<i64: 1, 32, 128>}]} {
    %c0 = arith.constant 0 : index
    %c0_0 = arith.constant 0 : index
    %c0_1 = arith.constant 0 : index
    %0 = vector.load %arg1[%c0, %c0_0, %c0_1] : memref<1x16x64xbf16, #tpu.memory_space<vmem>>, vector<1x16x64xbf16>
    %1 = vector.shape_cast %0 : vector<1x16x64xbf16> to vector<16x64xbf16>
    %c0_2 = arith.constant 0 : index
    %c0_3 = arith.constant 0 : index
    %2 = vector.load %arg2[%c0_2, %c0_3] : memref<64x128xbf16, #tpu.memory_space<vmem>>, vector<64x128xbf16>
    %cst = arith.constant dense<0.000000e+00> : vector<16x128xf32>
    %3 = tpu.matmul %1, %2, %cst {dimension_numbers = #tpu.dot_dimension_numbers<[1], [0], [0], [1], [0, 0, 1, 1], [], []>} : vector<16x64xbf16>, vector<64x128xbf16>, vector<16x128xf32> -> vector<16x128xf32>
    %4 = arith.truncf %3 : vector<16x128xf32> to vector<16x128xbf16>
    %c0_4 = arith.constant 0 : index
    %c0_5 = arith.constant 0 : index
    %5 = vector.load %arg3[%c0_4, %c0_5] : memref<32x16xbf16, #tpu.memory_space<vmem>>, vector<32x16xbf16>
    %c0_6 = arith.constant 0 : index
    %c0_7 = arith.constant 0 : index
    %6 = vector.load %arg4[%c0_6, %c0_7] : memref<1x128xf32, #tpu.memory_space<vmem>>, vector<1x128xf32>
    %7 = vector.shape_cast %6 : vector<1x128xf32> to vector<1x128xf32>
    %8 = vector.broadcast %7 : vector<1x128xf32> to vector<32x128xf32>
    %cst_8 = arith.constant dense<0.000000e+00> : vector<32x128xf32>
    %9 = tpu.matmul %5, %4, %cst_8 {dimension_numbers = #tpu.dot_dimension_numbers<[1], [0], [0], [1], [0, 0, 1, 1], [], []>} : vector<32x16xbf16>, vector<16x128xbf16>, vector<32x128xf32> -> vector<32x128xf32>
    %c0_9 = arith.constant 0 : index
    %c0_10 = arith.constant 0 : index
    %c0_11 = arith.constant 0 : index
    %10 = vector.load %arg5[%c0_9, %c0_10, %c0_11] : memref<1x32x128xf32, #tpu.memory_space<vmem>>, vector<1x32x128xf32>
    %11 = vector.shape_cast %10 : vector<1x32x128xf32> to vector<32x128xf32>
    %12 = arith.addf %9, %8 : vector<32x128xf32>
    %13 = arith.addf %12, %11 : vector<32x128xf32>
    %cst_12 = arith.constant -3.125000e-02 : f32
    %14 = vector.broadcast %cst_12 : f32 to vector<32x128xf32>
    %15 = arith.cmpf ogt, %13, %14 : vector<32x128xf32>
    %cst_13 = arith.constant 5.000000e-01 : f32
    %16 = vector.broadcast %cst_13 : f32 to vector<32x128xf32>
    %17 = arith.mulf %16, %13 : vector<32x128xf32>
    %cst_14 = arith.constant 0.333333343 : f32
    %18 = vector.broadcast %cst_14 : f32 to vector<32x128xf32>
    %19 = arith.mulf %13, %18 : vector<32x128xf32>
    %cst_15 = arith.constant 1.000000e+00 : f32
    %20 = vector.broadcast %cst_15 : f32 to vector<32x128xf32>
    %21 = arith.addf %20, %19 : vector<32x128xf32>
    %22 = arith.mulf %17, %21 : vector<32x128xf32>
    %cst_16 = arith.constant 1.000000e+00 : f32
    %23 = vector.broadcast %cst_16 : f32 to vector<32x128xf32>
    %24 = arith.addf %23, %22 : vector<32x128xf32>
    %25 = arith.mulf %13, %24 : vector<32x128xf32>
    %cst_17 = arith.constant 0.000000e+00 : f32
    %26 = vector.broadcast %cst_17 : f32 to vector<32x128xf32>
    %27 = arith.minimumf %13, %26 : vector<32x128xf32>
    %28 = math.exp %27 : vector<32x128xf32>
    %cst_18 = arith.constant 1.000000e+00 : f32
    %29 = vector.broadcast %cst_18 : f32 to vector<32x128xf32>
    %30 = arith.subf %28, %29 : vector<32x128xf32>
    %31 = arith.select %15, %25, %30 : vector<32x128xi1>, vector<32x128xf32>
    %cst_19 = arith.constant 0.000000e+00 : f32
    %32 = vector.broadcast %cst_19 : f32 to vector<32x128xf32>
    %33 = arith.cmpf ogt, %13, %32 : vector<32x128xf32>
    %34 = arith.select %33, %13, %31 : vector<32x128xi1>, vector<32x128xf32>
    %35 = vector.shape_cast %34 : vector<32x128xf32> to vector<1x32x128xf32>
    %c0_20 = arith.constant 0 : index
    %c0_21 = arith.constant 0 : index
    %c0_22 = arith.constant 0 : index
    %36 = vector.load %arg6[%c0_20, %c0_21, %c0_22] : memref<1x32x128xf32, #tpu.memory_space<vmem>>, vector<1x32x128xf32>
    tpu.vector_store %arg6[%c0_20, %c0_21, %c0_22], %35 {strides = array<i32>} : memref<1x32x128xf32, #tpu.memory_space<vmem>>, vector<1x32x128xf32>,
    return
  }
  func.func @transform_0(%arg0: i32) -> (i32, i32, i32) {
    %c0_i32 = arith.constant 0 : i32
    %c0_i32_0 = arith.constant 0 : i32
    %c0_i32_1 = arith.constant 0 : i32
    return %arg0, %c0_i32, %c0_i32_0 : i32, i32, i32
  }
  func.func @transform_1(%arg0: i32) -> (i32, i32) {
    %c0_i32 = arith.constant 0 : i32
    %c0_i32_0 = arith.constant 0 : i32
    %c0_i32_1 = arith.constant 0 : i32
    return %c0_i32, %c0_i32_0 : i32, i32
  }
  func.func @transform_2(%arg0: i32) -> (i32, i32) {
    %c0_i32 = arith.constant 0 : i32
    %c0_i32_0 = arith.constant 0 : i32
    %c0_i32_1 = arith.constant 0 : i32
    return %c0_i32, %c0_i32_0 : i32, i32
  }
  func.func @transform_3(%arg0: i32) -> (i32, i32) {
    %c0_i32 = arith.constant 0 : i32
    %c0_i32_0 = arith.constant 0 : i32
    %c0_i32_1 = arith.constant 0 : i32
    return %c0_i32, %c0_i32_0 : i32, i32
  }
  func.func @transform_4(%arg0: i32) -> (i32, i32, i32) {
    %c0_i32 = arith.constant 0 : i32
    %c0_i32_0 = arith.constant 0 : i32
    %c0_i32_1 = arith.constant 0 : i32
    return %arg0, %c0_i32, %c0_i32_0 : i32, i32, i32
  }
  func.func @transform_5(%arg0: i32) -> (i32, i32, i32) {
    %c0_i32 = arith.constant 0 : i32
    %c0_i32_0 = arith.constant 0 : i32
    %c0_i32_1 = arith.constant 0 : i32
    return %arg0, %c0_i32, %c0_i32_0 : i32, i32, i32
  }
}

</mosaic_0001>

<bundles_post_ra>
// kernel: tpu_custom_call.1
= control target key start
LH: loop header
LB: loop body
LE: loop exit
PB: predicated region body
PF: predicated region fallthrough
CT: control target
= control target key end

     0   :  { %10 = vsyncpa [#allocation3], 0  ;;  %s1158_s0 = inlined_call_operand.vmem [shape: bf16[2,16,64], index: 0, kind: input, shape index: {}]   ;;  %s1159_s1 = inlined_call_operand.hbm [shape: bf16[64,128], index: 1, kind: input, shape index: {}]   ;;  %s1160_s2 = inlined_call_operand.vmem [shape: bf16[32,16], index: 2, kind: input, shape index: {}]   ;;  %s1161_s3 = inlined_call_operand.vmem [shape: f32[1,128], index: 3, kind: input, shape index: {}]   ;;  %s1162_s4 = inlined_call_operand.hbm [shape: f32[2,32,128], index: 4, kind: input, shape index: {}]   ;;  %s1163_s5 = inlined_call_operand.hbm [shape: f32[2,32,128], index: 5, kind: output, shape index: {}]  }
   0x1   :  { %11 = vsyncpa [#allocation6], 0 }
   0x2   :  { %13 = vsyncpa [#allocation6 + $0x1], 0 }
   0x3   :  { %14 = vsyncpa [#allocation4], 0 }
   0x4   :  { %16 = vsyncpa [#allocation4 + $0x1], 0  ;;  %s933_s18 = smov 0   ;;  %s935_s19 = smov 0  }
   0x5   :  { %s937_s20 = smov 0   ;;  %s939_s21 = smov 0  }
   0x6 LB: > { %s954_s22 = sadd.s32 4294967295, %s890_s21   ;;  %s620_s23 = sadd.s32 4294967294, %s890_s21   ;;  %s890_s21 = sphi %s939_s21, %s1183_s21   ;;  %s886_s20 = sphi %s937_s20, %s1182_s20   ;;  %s882_s19 = sphi %s935_s19, %s1181_s19   ;;  %s878_s18 = sphi %s933_s18, %s1180_s18  }
   0x7   : > { %p131_p0 = scmp.ne.s32.totalorder %s882_s19, %s878_s18  ;;  %p1164_p1 = scmp.eq.s32.totalorder %s954_s22, 0 }
   0x8   : > { %p161_p3 = scmp.eq.s32.totalorder %s620_s23, 1  ;;  %p621_p5 = scmp.ge.s32.totalorder %s890_s21, 1 }
   0x9   : > { %p963_p4 = por %p1164_p1, %p131_p0  ;;  %p168_p7 = scmp.lt.s32.totalorder %s890_s21, 3 }
   0xa   : > { %p968_p6 = por %p161_p3, %p131_p0  ;;  %s892_s27 = smov [#allocation2]  }
   0xb   : > { %s1167_s24 = scalar_select %p963_p4, 1, 0 }
   0xc   : > { %s1168_s25 = scalar_select %p968_p6, 1, 0 }
   0xd   : > { %p973_p8 = pnand %p621_p5, %p168_p7  ;;  %s180_s28 = sshll.u32 %s892_s27, 4  ;;  %s977_s28 = int_to_ptr.vmem [resolvable:$true] %s180_s28 }
   0xe   : > { %s989_s30 = sadd.s32 1, %s890_s21   ;;  %s118_s6 = sadd.s32 1, %s886_s20 }
   0xf   : > { %s1169_s26 = scalar_select %p973_p8, 1, 0 }
  0x10   : > { %p690_p9 = pneg %p973_p8  ;;  %s115_s7 = ssub.s32 %s890_s21, %s989_s30 }
  0x11   : > { %s762_s10 = scalar_lea.hbm %s1159_s1, 512 }
  0x12   : > { %p984_p11 = pnand %p690_p9, %p1164_p1  ;;  %p763_p12 = scmp.ne.s32.totalorder %s1159_s1, %s762_s10 }
  0x13   : > { %p769_p5 = scmp.lt.u32.totalorder %s762_s10, %s1159_s1 }
  0x14   : > { %p764_p13 = pneg %p984_p11 }
  0x16   : > { %p765_p0 = pnand %p764_p13, %p763_p12 }
  0x18   : > { %p766_p3 = pneg %p765_p0 }
  0x1a   : > { %p771_p7 = pnand %p769_p5, %p766_p3 }
  0x1c   : > { %774 = shalt.err (!%p771_p7)
}
  0x1d   : > { %s775_s15 = scalar_lea.vmem %s977_s28, 512  ;;  %p783_p2 = scmp.lt.s32.totalorder %s977_s28, %s977_s28 }
  0x1e   : > { %p776_p9 = scmp.ne.s32.totalorder %s977_s28, %s775_s15  ;;  %p784_p6 = scmp.lt.s32.totalorder %s775_s15, %s775_s15 }
  0x20   : > { %p778_p10 = pnand %p776_p9, %p764_p13  ;;  %p785_p4 = por %p784_p6, %p783_p2 }
  0x22   : > { %p779_p1 = pneg %p778_p10 }
  0x24   : > { %p786_p8 = pnand %p785_p4, %p779_p1 }
  0x26   : > { %789 = shalt.err (!%p786_p8)
}
  0x27   : > { %s893_s16 = smov 64   ;;  %s894_s17 = smov 4  }
  0x28   : > { %693 = dma.hbm_to_vmem [thread:$0]  (!%p984_p11), %s1159_s1, 512, %s977_s28, [#allocation3], %s893_s16, %s893_s16, %s894_s17  }
  0x29   : > { %p116_p2 = scmp.eq.s32.totalorder %s115_s7, 0  ;;  %p125_p1 = scmp.ne.s32.totalorder %s886_s20, %s882_s19 }
  0x2a   : > { %p126_p4 = scmp.eq.s32.totalorder %s890_s21, 0  ;;  %p703_p6 = scmp.lt.s32.totalorder %s890_s21, 2 }
  0x2b   : > { %s1020_s8 = scalar_select %p116_p2, %s886_s20, %s118_s6  }
  0x2c   : > { %p127_p8 = por %p126_p4, %p125_p1  ;;  %p1171_p10 = scmp.eq.s32.totalorder %s954_s22, 1 }
  0x2d   : > { %s208_s10 = sand.u32 1, %s886_s20   ;;  %s653_s11 = sshll.u32 %s890_s21, 9 }
  0x2e   : > { %p1024_p12 = por %p1171_p10, %p125_p1  ;;  %s624_s12 = sshll.u32 %s208_s10, 5 }
  0x2f   : > { %s1033_s14 = scalar_lea.hbm %s1162_s4, %s653_s11  ;;  %s212_s28 = scalar_lea.vmem [#allocation5], %s624_s12 }
  0x30   : > { %s219_s6 = sshll.u32 %s212_s28, 4  ;;  %p1035_p11 = pnand %p703_p6, %p127_p8  ;;  %s1039_s6 = int_to_ptr.vmem [resolvable:$true] %s219_s6 }
  0x31   : > { %s1041_s15 = scalar_lea.sflag [#allocation6], %s208_s10  ;;  %s790_s16 = scalar_lea.hbm %s1033_s14, 512 }
  0x32   : > { %p791_p13 = scmp.ne.s32.totalorder %s1033_s14, %s790_s16  ;;  %p792_p0 = pneg %p1035_p11 }
  0x33   : > { %s795_s27 = scalar_lea.hbm %s1162_s4, 1024  ;;  %p796_p7 = scmp.lt.u32.totalorder %s1033_s14, %s1162_s4 }
  0x34   : > { %p793_p3 = pnand %p792_p0, %p791_p13  ;;  %p797_p9 = scmp.lt.u32.totalorder %s795_s27, %s790_s16 }
  0x35   : > { %p799_p1 = scmp.lt.u32.totalorder %s790_s16, %s1033_s14 }
  0x36   : > { %p794_p5 = pneg %p793_p3  ;;  %p798_p2 = por %p797_p9, %p796_p7 }
  0x38   : > { %p800_p4 = por %p799_p1, %p798_p2 }
  0x3a   : > { %p801_p6 = pnand %p800_p4, %p794_p5 }
  0x3c   : > { %804 = shalt.err (!%p801_p6)
}
  0x3d   : > { %s805_s10 = scalar_lea.vmem %s1039_s6, 512  ;;  %s895_s29 = smov [#allocation5]  }
  0x3e   : > { %p806_p8 = scmp.ne.s32.totalorder %s1039_s6, %s805_s10  ;;  %s810_s13 = sshll.u32 %s895_s29, 4  ;;  %s811_s13 = int_to_ptr.vmem [resolvable:$false] %s810_s13 }
  0x3f   : > { %s812_s28 = scalar_lea.vmem %s811_s13, 1024  ;;  %p813_p3 = scmp.lt.s32.totalorder %s1039_s6, %s811_s13 }
  0x40   : > { %p808_p10 = pnand %p806_p8, %p792_p0  ;;  %p814_p7 = scmp.lt.s32.totalorder %s812_s28, %s805_s10 }
  0x42   : > { %p809_p13 = pneg %p808_p10  ;;  %p815_p9 = por %p814_p7, %p813_p3 }
  0x44   : > { %p816_p2 = pnand %p815_p9, %p809_p13 }
  0x46   : > { %819 = shalt.err (!%p816_p2)
}
  0x47   : > { %s896_s16 = smov 128   ;;  %s897_s17 = smov 8  }
  0x48   : > { %697 = dma.hbm_to_vmem [thread:$0]  (!%p1035_p11), %s1033_s14, 512, %s1039_s6, %s1041_s15, %s896_s16, %s896_s16, %s897_s17  }
  0x49   : > { %p1174_p0 = scmp.ne.s32.totalorder %s1169_s26, 0 }
  0x4a   : > { %p1175_p5 = scmp.eq.s32.totalorder (!%p1174_p0), %s954_s22, 0 }
  0x4b   : > { %231 = sbr.rel (%p1174_p0) target bundleno = 577 (0x241), region = 40 }
  0x52   : > { %865 = dma.done.wait (%p1175_p5), [#allocation3], 512   ;;  %p1176_p1 = pmov %p1175_p5 }
  0x53   : > { %s1076_s23 = sand.u32 1, %s882_s19   ;;  %p1177_p11 = scmp.ne.s32.totalorder %s1167_s24, 0 }
  0x54   : > { %867 = vsyncadd (%p1176_p1), [#allocation3], 4294966784  ;;  %s629_s27 = sshll.u32 %s1076_s23, 5  ;;  %s238_s11 = scalar_lea.sflag [#allocation6], %s1076_s23 }
  0x55   : > { %s1082_s14 = scalar_lea.vmem [#allocation5], %s629_s27 }
  0x56   : > { %869 = dma.done.wait (%p1177_p11), %s238_s11, 512  }
  0x57   : > { %871 = vsyncadd (%p1177_p11), %s238_s11, 4294966784  ;;  %p273_p4 = scmp.lt.s32.totalorder %s954_s22, 1  ;;  %v898_v0 = vmov 0.0   ;;  %vm899_vm0 = vmmov 0   ;;  %v747_v1 = vld [vmem:[#allocation2] sm:$0xff]   ;;  %v748_v2 = vld [vmem:[#allocation2 + $0x8] sm:$0xff]  }
  0x58   : > { %664 = vmatprep.subr.bf16.mxu0 %v898_v0  ;;  %672 = vmatprep.mubr.msk.bf16.mxu0 %vm899_vm0, %v898_v0  ;;  %v749_v3 = vld [vmem:[#allocation2 + $0x10] sm:$0xff]   ;;  %v750_v4 = vld [vmem:[#allocation2 + $0x18] sm:$0xff]   ;;  %vm318_vm1 = vcmask 523264   ;;  %v752_v6 = vld [vmem:[%s1160_s2] sm:$0xff]   ;;  %vm389_vm2 = vcmask 130048   ;;  %s272_s17 = scalar_lea.vmem [#allocation7], %s629_s27 }
  0x59   : > { %s274_s26 = scalar_select %p273_p4, %s954_s22, 1  ;;  %665 = vmatpush3.bf16.msra.mxu0 %v747_v1  ;;  %678 = vmatprep.mubr.msk.bf16.mxu1 %vm389_vm2, %v752_v6  ;;  %v753_v12 = vld [vmem:[%s1160_s2 + $0x8] sm:$0xff]   ;;  %v639_v13 = vld [vmem:[%s1161_s3] ss:$0 sm:$0xff]  ;;  %v377_v14 = vld [vmem:[%s1082_s14 + $0x10] sm:$0xff] }
  0x5a   : > { %666 = vmatprep.subr.bf16.mxu0 %v898_v0  ;;  %v375_v17 = vld [vmem:[%s1082_s14] sm:$0xff]  ;;  %v378_v27 = vld [vmem:[%s1082_s14 + $0x18] sm:$0xff]  ;;  %v376_v30 = vld [vmem:[%s1082_s14 + $0x8] sm:$0xff]  ;;  %s655_s11 = sshll.u32 %s954_s22, 9  ;;  %s523_s14 = sshll.u32 %s272_s17, 4  ;;  %s1114_s14 = int_to_ptr.vmem [resolvable:$true] %s523_s14 }
  0x5b   : > { %s654_s6 = sshll.u32 %s274_s26, 3  ;;  %s510_s22 = scalar_lea.sflag [#allocation4], %s1076_s23 }
  0x5c   : > { %s277_s12 = scalar_lea.vmem %s1158_s0, %s654_s6  ;;  %s1112_s6 = scalar_lea.hbm %s1163_s5, %s655_s11 }
  0x5d   : > { %667 = vmatpush3.bf16.msra.mxu0 %v748_v2  ;;  %v751_v5 = vld [vmem:[%s277_s12] sm:$0xff]   ;;  %s820_s7 = scalar_lea.vmem %s1114_s14, 512  ;;  %s900_s15 = smov [#allocation7]  }
  0x5e   : > { %668 = vmatprep.subr.bf16.mxu0 %v898_v0  ;;  %p821_p6 = scmp.ne.s32.totalorder %s1114_s14, %s820_s7  ;;  %s824_s12 = sshll.u32 %s900_s15, 4  ;;  %s825_s12 = int_to_ptr.vmem [resolvable:$false] %s824_s12 }
  0x5f   : > { %s826_s24 = scalar_lea.vmem %s825_s12, 1024  ;;  %p827_p13 = scmp.lt.s32.totalorder %s1114_s14, %s825_s12 }
  0x60   : > { %p822_p8 = pnand %p821_p6, %p1024_p12  ;;  %p828_p3 = scmp.lt.s32.totalorder %s826_s24, %s820_s7 }
  0x61   : > { %669 = vmatpush3.bf16.msra.mxu0 %v749_v3 }
  0x62   : > { %670 = vmatprep.subr.bf16.mxu0 %v898_v0  ;;  %p823_p10 = pneg %p822_p8  ;;  %p829_p7 = por %p828_p3, %p827_p13 }
  0x64   : > { %p830_p9 = pnand %p829_p7, %p823_p10 }
  0x65   : > { %671 = vmatpush3.bf16.msra.mxu0 %v750_v4 }
  0x68   : > { %673 = vmatmul.mubr.msk.bf16.vlgmr.msra.gmra.mrb[0].mxu0 %vm318_vm1, %v751_v5 }
 0x13b   : > { %v356_v7 = vpop.f32.mrb[0].mxu0 }
 0x13c   : > { %v674_v8 = vpop.f32.mrb[1].mxu0 }
 0x13d   : > { %v359_v9 = vpop.f32.mrb[2].mxu0 }
 0x13e   : > { %v363_v10 = vpack.c.bf16 %v359_v9, %v356_v7  ;;  %v675_v11 = vpop.f32.mrb[3].mxu0 }
 0x140   : > { %676 = vmatprep.subr.bf16.mxu1 %v363_v10 }
 0x141   : > { %677 = vmatpush3.bf16.msra.mxu1 %v363_v10 }
 0x144   : > { %679 = vmatmul.mubr.msk.bf16.vlgmr.msra.gmra.mrb[0].mxu1 %vm389_vm2, %v753_v12 }
 0x217   : > { %v680_v15 = vpop.f32.mrb[0].mxu1 }
 0x218   : > { %v439_v16 = vadd.f32 %v680_v15, %v639_v13  ;;  %v430_v18 = vpop.f32.mrb[1].mxu1 }
 0x219   : > { %v431_v19 = vadd.f32 %v639_v13, %v430_v18  ;;  %v681_v20 = vpop.f32.mrb[2].mxu1 }
 0x21a   : > { %v447_v21 = vadd.f32 %v439_v16, %v377_v14  ;;  %v433_v22 = vpop.f32.mrb[3].mxu1  ;;  %v442_v24 = vadd.f32 %v681_v20, %v639_v13 }
 0x21b   : > { %v445_v23 = vadd.f32 %v431_v19, %v375_v17  ;;  %v434_v28 = vadd.f32 %v639_v13, %v433_v22 }
 0x21c   : > { %v459_v25 = vmul.f32 0.33333334, %v447_v21  ;;  %v479_v26 = vmin.f32 %v447_v21, 0.0  ;;  %v448_v34 = vadd.f32 %v442_v24, %v378_v27  ;;  %v455_v37 = vmul.f32 0.5, %v447_v21 }
 0x21d   : > { %v457_v29 = vmul.f32 0.33333334, %v445_v23  ;;  %v477_v32 = vmin.f32 %v445_v23, 0.0  ;;  %v446_v36 = vadd.f32 %v434_v28, %v376_v30  ;;  %v453_v42 = vmul.f32 0.5, %v445_v23 }
 0x21e   : > { %v485_v31 = vmul.f32 1.442695, %v479_v26  ;;  %v463_v33 = vadd.f32 1.0, %v459_v25  ;;  %v460_v39 = vmul.f32 0.33333334, %v448_v34  ;;  %v480_v40 = vmin.f32 %v448_v34, 0.0 }
 0x21f   : > { %v481_v35 = vmul.f32 1.442695, %v477_v32  ;;  %v461_v38 = vadd.f32 1.0, %v457_v29  ;;  %v458_v44 = vmul.f32 0.33333334, %v446_v36  ;;  %v478_v45 = vmin.f32 %v446_v36, 0.0 }
 0x220   : > { %754 = vpow2.f32 %v485_v31  ;;  %v467_v41 = vmul.f32 %v463_v33, %v455_v37  ;;  %v487_v43 = vmul.f32 1.442695, %v480_v40  ;;  %v464_v47 = vadd.f32 1.0, %v460_v39 }
 0x221   : > { %756 = vpow2.f32 %v481_v35  ;;  %v465_v46 = vmul.f32 %v461_v38, %v453_v42  ;;  %v483_v48 = vmul.f32 1.442695, %v478_v45  ;;  %v456_v50 = vmul.f32 0.5, %v448_v34 }
 0x222   : > { %758 = vpow2.f32 %v487_v43  ;;  %v471_v49 = vadd.f32 1.0, %v467_v41  ;;  %v462_v51 = vadd.f32 1.0, %v458_v44  ;;  %v454_v54 = vmul.f32 0.5, %v446_v36 }
 0x223   : > { %760 = vpow2.f32 %v483_v48  ;;  %v469_v52 = vadd.f32 1.0, %v465_v46  ;;  %v468_v53 = vmul.f32 %v464_v47, %v456_v50  ;;  %vm451_vm3 = vcmp.gt.f32.partialorder %v447_v21, -0.03125 }
 0x224   : > { %v475_v56 = vmul.f32 %v471_v49, %v447_v21  ;;  %v466_v58 = vmul.f32 %v462_v51, %v454_v54  ;;  %vm499_vm4 = vcmp.gt.f32.partialorder %v447_v21, 0.0  ;;  %vm449_vm5 = vcmp.gt.f32.partialorder %v445_v23, -0.03125 }
 0x225   : > { %v473_v60 = vmul.f32 %v469_v52, %v445_v23  ;;  %v472_v62 = vadd.f32 1.0, %v468_v53  ;;  %vm497_vm6 = vcmp.gt.f32.partialorder %v445_v23, 0.0  ;;  %vm452_vm7 = vcmp.gt.f32.partialorder %v448_v34, -0.03125 }
 0x226   : > { %v470_v1 = vadd.f32 1.0, %v466_v58  ;;  %vm500_vm8 = vcmp.gt.f32.partialorder %v448_v34, 0.0  ;;  %vm450_vm9 = vcmp.gt.f32.partialorder %v446_v36, -0.03125  ;;  %vm498_vm10 = vcmp.gt.f32.partialorder %v446_v36, 0.0 }
 0x227   : > { %v476_v5 = vmul.f32 %v472_v62, %v448_v34 }
 0x228   : > { %v474_v8 = vmul.f32 %v470_v1, %v446_v36 }
 0x22a   : > { %v755_v55 = vpop.eup %754 }
 0x22b   : > { %v646_v57 = vadd.f32 -1.0, %v755_v55  ;;  %v757_v59 = vpop.eup %756 }
 0x22c   : > { %v644_v61 = vadd.f32 -1.0, %v757_v59  ;;  %v759_v3 = vpop.eup %758 }
 0x22d   : > { %v495_v63 = vsel %vm451_vm3, %v475_v56, %v646_v57  ;;  %v647_v6 = vadd.f32 -1.0, %v759_v3  ;;  %v761_v7 = vpop.eup %760 }
 0x22e   : > { %v503_v0 = vsel %vm499_vm4, %v447_v21, %v495_v63  ;;  %v493_v2 = vsel %vm449_vm5, %v473_v60, %v644_v61  ;;  %v645_v9 = vadd.f32 -1.0, %v761_v7 }
 0x22f   : > { %507 = vst [vmem:[%s272_s17 + $0x10] sm:$0xff] %v503_v0  ;;  %v501_v4 = vsel %vm497_vm6, %v445_v23, %v493_v2  ;;  %v496_v10 = vsel %vm452_vm7, %v476_v5, %v647_v6 }
 0x230   : > { %505 = vst [vmem:[%s272_s17] sm:$0xff] %v501_v4  ;;  %v504_v11 = vsel %vm500_vm8, %v448_v34, %v496_v10  ;;  %v494_v12 = vsel %vm450_vm9, %v474_v8, %v645_v9 }
 0x231   : > { %508 = vst [vmem:[%s272_s17 + $0x18] sm:$0xff] %v504_v11  ;;  %v502_v13 = vsel %vm498_vm10, %v446_v36, %v494_v12 }
 0x232   : > { %506 = vst [vmem:[%s272_s17 + $0x8] sm:$0xff] %v502_v13 }
 0x233   : > { %833 = shalt.err (!%p830_p9)
}
 0x234   : > { %s834_s10 = scalar_lea.hbm %s1112_s6, 512  ;;  %s838_s28 = scalar_lea.hbm %s1163_s5, 1024 }
 0x235   : > { %p835_p2 = scmp.ne.s32.totalorder %s1112_s6, %s834_s10  ;;  %p839_p1 = scmp.lt.u32.totalorder %s1112_s6, %s1163_s5 }
 0x236   : > { %p840_p11 = scmp.lt.u32.totalorder %s838_s28, %s834_s10  ;;  %p842_p6 = scmp.lt.u32.totalorder %s834_s10, %s1112_s6 }
 0x237   : > { %p836_p0 = pnand %p835_p2, %p1024_p12 }
 0x238   : > { %p841_p4 = por %p840_p11, %p839_p1 }
 0x239   : > { %p837_p5 = pneg %p836_p0 }
 0x23a   : > { %p843_p8 = por %p842_p6, %p841_p4 }
 0x23c   : > { %p844_p10 = pnand %p843_p8, %p837_p5 }
 0x23e   : > { %847 = shalt.err (!%p844_p10)
}
 0x23f   : > { %s901_s11 = smov 128   ;;  %s902_s26 = smov 8  }
 0x240   : > { %688 = dma.vmem_to_hbm [thread:$0]  (%p1024_p12), %s1114_s14, 512, %s1112_s6, %s510_s22, %s901_s11, %s901_s11, %s902_s26  }
 0x241 PF: > { %s538_s27 = sand.u32 1, %s878_s18   ;;  %p1178_p13 = scmp.ne.s32.totalorder %s1168_s25, 0 }
 0x242   : > { %p1179_p3 = scmp.ge.s32.totalorder %s890_s21, 2  ;;  %s539_s7 = scalar_lea.sflag [#allocation4], %s538_s27 }
 0x244   : > { %p699_p7 = pnand %p1179_p3, %p1178_p13 }
 0x246   : > { %873 = dma.done.wait (!%p699_p7), %s539_s7, 512  }
 0x247   : > { %875 = vsyncadd (!%p699_p7), %s539_s7, 4294966784  ;;  %p19_p9 = scmp.ge.s32.totalorder %s989_s30, 4   ;;  %s1180_s18 = smov %s882_s19 }
 0x248   : > { %s1181_s19 = smov %s886_s20  ;;  %s1182_s20 = smov %s1020_s8 }
 0x249   : > { %s1183_s21 = smov %s989_s30  ;;  %21 = sbr.rel (!%p19_p9) target bundleno = 6 (0x6), region = 93 }
 0x250   :  { %544 = vsyncpa [#allocation3], 1 }
 0x251   :  { %546 = vsyncpa [#allocation3 + $0x1], 1 }
 0x252   :  { %547 = vsyncpa [#allocation6], 1 }
 0x253   :  { %549 = vsyncpa [#allocation6 + $0x1], 1 }
 0x254   :  { %550 = vsyncpa [#allocation4], 1 }
 0x255   :  { %552 = vsyncpa [#allocation4 + $0x1], 1 }

</bundles_post_ra>
